<compile_context>
chip_gen: v6e
topology: v6e:2x2x1
jax: 0.10.0
libtpu: 0.0.40
codegen_flags: <defaults>
</compile_context>

<pallas_src>
import math
import functools

import jax
import jax.numpy as jnp
from jax import lax
from jax.experimental import pallas as pl
from jax.experimental.pallas import tpu as pltpu


def bert_attention_kernel(
    x_ref, wq_ref, wk_ref, wv_ref, wo_ref, vec_ref, out_ref,
    k_sc, v_sc, q_sc, ctx_sc,
    *, num_heads, head_dim, q_tile, ln_eps,
):
    qi = pl.program_id(1)

    vecs = vec_ref[...]                                    # (8, H) f32 packed slab
    bq, bk = vecs[0:1, :], vecs[1:2, :]
    bv, bo = vecs[2:3, :], vecs[3:4, :]
    gamma, beta = vecs[4:5, :], vecs[5:6, :]

    # K/V for the full sequence: computed once per batch element (first query tile) and
    # cached head-major in VMEM scratch reused by the remaining query tiles.
    @pl.when(qi == 0)
    def _():
        xk = x_ref[0].astype(jnp.bfloat16)                 # (S, H)
        k = jnp.dot(xk, wk_ref[...], preferred_element_type=jnp.float32) + bk
        v = jnp.dot(xk, wv_ref[...], preferred_element_type=jnp.float32) + bv
        # Cheap static split into head-major layout (once per batch element), so the hot
        # per-head loop below only ever indexes leading axes.
        for h in range(num_heads):
            lo = h * head_dim
            k_sc[h] = k[:, lo:lo + head_dim].astype(k_sc.dtype)
            v_sc[h] = v[:, lo:lo + head_dim].astype(v_sc.dtype)

    # Query tile sliced out of the already-resident full-sequence block: x is DMA'd from HBM
    # exactly once per batch element (used for both the Q projection and the residual add).
    q_start = pl.multiple_of(qi * q_tile, q_tile)
    xq = x_ref[0, pl.ds(q_start, q_tile), :]               # (TQ, H) input dtype

    scale = 1.0 / math.sqrt(head_dim)
    q = jnp.dot(xq.astype(jnp.bfloat16), wq_ref[...],
                preferred_element_type=jnp.float32) + bq   # (TQ, H) f32
    q = q * scale                                          # fold 1/sqrt(hd) into Q once
    for h in range(num_heads):                             # cheap static head split
        lo = h * head_dim
        q_sc[h] = q[:, lo:lo + head_dim].astype(q_sc.dtype)

    # Per-head attention inside a fori_loop: only one (TQ, S) score/prob temporary set is
    # live at a time; all per-head indexing is on a leading (major) scratch axis.
    dn = (((1,), (1,)), ((), ()))                          # contract last dims: Q . K^T

    def head_body(h, carry):
        qh = q_sc[h]                                       # (TQ, hd) bf16
        kh = k_sc[h]                                       # (S,  hd) bf16
        vh = v_sc[h]                                       # (S,  hd) bf16
        s = lax.dot_general(qh, kh, dn,
                            preferred_element_type=jnp.float32)    # (TQ, S) f32
        m = jnp.max(s, axis=-1, keepdims=True)
        # bf16 exp relieves the single EUP slot on v6e/v7x; denominator stays f32.
        p = jnp.exp((s - m).astype(jnp.bfloat16))                  # (TQ, S) bf16
        denom = jnp.sum(p.astype(jnp.float32), axis=-1, keepdims=True)
        inv = pl.reciprocal(denom, approx=True)                    # (TQ, 1) f32
        ctx = jnp.dot(p, vh, preferred_element_type=jnp.float32)   # (TQ, hd) f32
        ctx_sc[h] = (ctx * inv).astype(ctx_sc.dtype)               # fold denom, store bf16
        return carry

    lax.fori_loop(0, num_heads, head_body, 0)
    # TODO(synk): attention-prob / output dropout not applied (inference semantics).

    # Re-pack heads (static lane writes) and run the Wo projection with full-K contraction,
    # then residual + LayerNorm in f32.
    ctx_all = jnp.concatenate([ctx_sc[h] for h in range(num_heads)], axis=-1)  # (TQ, H) bf16
    proj = jnp.dot(ctx_all, wo_ref[...], preferred_element_type=jnp.float32) + bo
    y = xq.astype(jnp.float32) + proj
    mu = jnp.mean(y, axis=-1, keepdims=True)
    var = jnp.mean((y - mu) ** 2, axis=-1, keepdims=True)
    y_hat = (y - mu) * lax.rsqrt(var + ln_eps)
    out_ref[0] = (y_hat * gamma + beta).astype(out_ref.dtype)


def _tpu_vmem_capacity_bytes():
    try:
        return int(pltpu.get_tpu_info().vmem_capacity_bytes)
    except Exception:
        return 128 * 1024 * 1024                  # assume v5e/v6e-class if query fails


def bert_attention(x, params, *, num_heads, q_tile=None):
    B, S, H = x.shape
    assert H % num_heads == 0
    head_dim = H // num_heads
    itemsize = jnp.dtype(x.dtype).itemsize

    # ---- generation-aware configuration ----
    vmem_cap = _tpu_vmem_capacity_bytes()
    small_vmem = vmem_cap <= (80 << 20)           # v7x-class: 64 MiB per TC
    budget = min(int(vmem_cap * 0.80), 100 << 20) # ~52 MiB on v7x, ~100 MiB on v5e/v6e

    if q_tile is None:
        target = (128 if S >= 2048 else 256) if small_vmem else 512
        q_tile = S if S <= target else math.gcd(S, target)
    assert S % q_tile == 0 and (q_tile % 8 == 0 or q_tile == S)

    # Single-buffer the full-sequence x only where VMEM is tight (v7x + large S); elsewhere keep
    # double-buffering so the next batch's x prefetches under the last qi tiles.
    x_buffers = 1 if (small_vmem and S * H * itemsize > (4 << 20)) else 2

    hd_pad = -(-head_dim // 128) * 128            # lane padding of head-major scratch

    def footprint(tq):
        return (4 * H * H * 2                     # bf16 weights, single-buffered
                + 8 * H * 4                       # packed bias/gamma/beta slab
                + x_buffers * S * H * itemsize    # full-sequence x input
                + 2 * S * H * 4                   # K/V f32 temporaries of the qi==0 fill
                + 2 * tq * H * itemsize           # out tile, double-buffered
                + 2 * num_heads * S * hd_pad * 2  # K/V bf16 head-major caches
                + 2 * num_heads * tq * hd_pad * 2 # Q + ctx bf16 head-major scratch
                + tq * S * (4 + 4 + 2)            # scores f32, shifted f32, probs bf16
                + tq * H * (4 + 4 + 2))           # q f32, y f32, ctx_all bf16 temporaries

    while footprint(q_tile) > budget and q_tile >= 256:
        q_tile //= 2
    nq = S // q_tile
    vmem_limit = int(min(max(int(1.3 * footprint(q_tile)), 32 << 20), budget))

    # Weights pre-transposed to (in, out) and cast to bf16 for the MXU.
    wq_t = params["wq"].T.astype(jnp.bfloat16)
    wk_t = params["wk"].T.astype(jnp.bfloat16)
    wv_t = params["wv"].T.astype(jnp.bfloat16)
    wo_t = params["wo"].T.astype(jnp.bfloat16)

    # Pack bq, bk, bv, bo, gamma, beta into one (8, H) f32 slab (single spec / DMA).
    vecs = jnp.concatenate(
        [jnp.stack([params["bq"], params["bk"], params["bv"], params["bo"],
                    params["ln_gamma"], params["ln_beta"]], axis=0).astype(jnp.float32),
         jnp.zeros((2, H), jnp.float32)],
        axis=0)

    kernel = functools.partial(
        bert_attention_kernel,
        num_heads=num_heads, head_dim=head_dim, q_tile=q_tile, ln_eps=1e-5)

    # Constant blocks never change across grid steps -> single-buffer them.
    def const_spec(shape):
        return pl.BlockSpec(shape, lambda b, qi: (0, 0),
                            pipeline_mode=pl.Buffered(buffer_count=1))

    if x_buffers == 1:
        x_spec = pl.BlockSpec((1, S, H), lambda b, qi: (b, 0, 0),
                              pipeline_mode=pl.Buffered(buffer_count=1))
    else:
        x_spec = pl.BlockSpec((1, S, H), lambda b, qi: (b, 0, 0))

    return pl.pallas_call(
        kernel,
        out_shape=jax.ShapeDtypeStruct((B, S, H), x.dtype),
        grid_spec=pltpu.PrefetchScalarGridSpec(
            num_scalar_prefetch=0,
            grid=(B, nq),
            in_specs=[
                x_spec,               # x full sequence (query tiles sliced in-kernel)
                const_spec((H, H)),   # wq^T
                const_spec((H, H)),   # wk^T
                const_spec((H, H)),   # wv^T
                const_spec((H, H)),   # wo^T
                const_spec((8, H)),   # packed bq/bk/bv/bo/gamma/beta
            ],
            out_specs=pl.BlockSpec((1, q_tile, H), lambda b, qi: (b, qi, 0)),
            scratch_shapes=[
                pltpu.VMEM((num_heads, S, head_dim), jnp.bfloat16),       # K cache
                pltpu.VMEM((num_heads, S, head_dim), jnp.bfloat16),       # V cache
                pltpu.VMEM((num_heads, q_tile, head_dim), jnp.bfloat16),  # Q, head-major
                pltpu.VMEM((num_heads, q_tile, head_dim), jnp.bfloat16),  # ctx, head-major
            ],
        ),
        compiler_params=pltpu.CompilerParams(
            # qi must stay "arbitrary": K/V caches are filled at qi==0 and reused by that batch
            # element's remaining query tiles on the same core.  Only b is "parallel" -> on v7x
            # (2 TCs/chip) B >= 2 is required to occupy both TensorCores.
            dimension_semantics=("parallel", "arbitrary"),
            vmem_limit_bytes=vmem_limit,
        ),
    )(x, wq_t, wk_t, wv_t, wo_t, vecs)


def bert_attention_ref(x, params, *, num_heads):
    """Pure-JAX f32 reference (mirrors the PyTorch forward, dropout = identity)."""
    B, S, H = x.shape
    hd = H // num_heads
    lin = lambda a, w, b: a @ w.T + b
    q = lin(x, params["wq"], params["bq"]).reshape(B, S, num_heads, hd).transpose(0, 2, 1, 3)
    k = lin(x, params["wk"], params["bk"]).reshape(B, S, num_heads, hd).transpose(0, 2, 1, 3)
    v = lin(x, params["wv"], params["bv"]).reshape(B, S, num_heads, hd).transpose(0, 2, 1, 3)
    s = jnp.einsum("bhqd,bhkd->bhqk", q, k) / math.sqrt(hd)
    p = jax.nn.softmax(s, axis=-1)
    ctx = jnp.einsum("bhqk,bhkd->bhqd", p, v).transpose(0, 2, 1, 3).reshape(B, S, H)
    proj = lin(ctx, params["wo"], params["bo"])
    y = x + proj
    mu = jnp.mean(y, axis=-1, keepdims=True)
    var = jnp.mean((y - mu) ** 2, axis=-1, keepdims=True)
    return (y - mu) * lax.rsqrt(var + 1e-5) * params["ln_gamma"] + params["ln_beta"]


def make_params(key, hidden):
    ks = jax.random.split(key, 8)
    scale = 1.0 / math.sqrt(hidden)
    return {
        "wq": jax.random.normal(ks[0], (hidden, hidden), jnp.float32) * scale,
        "bq": jax.random.normal(ks[1], (hidden,), jnp.float32) * 0.02,
        "wk": jax.random.normal(ks[2], (hidden, hidden), jnp.float32) * scale,
        "bk": jax.random.normal(ks[3], (hidden,), jnp.float32) * 0.02,
        "wv": jax.random.normal(ks[4], (hidden, hidden), jnp.float32) * scale,
        "bv": jax.random.normal(ks[5], (hidden,), jnp.float32) * 0.02,
        "wo": jax.random.normal(ks[6], (hidden, hidden), jnp.float32) * scale,
        "bo": jax.random.normal(ks[7], (hidden,), jnp.float32) * 0.02,
        "ln_gamma": jnp.ones((hidden,), jnp.float32),
        "ln_beta": jnp.zeros((hidden,), jnp.float32),
    }


if __name__ == "__main__":
    # S=16 with q_tile=8 exercises the qi>0 path (K/V scratch reuse across query tiles).
    B, S, H, NUM_HEADS = 2, 16, 32, 4

    key = jax.random.PRNGKey(0)
    kx, kp = jax.random.split(key)
    x = jax.random.normal(kx, (B, S, H), jnp.float32)
    params = make_params(kp, H)

    out = bert_attention(x, params, num_heads=NUM_HEADS, q_tile=8)
    out = jax.block_until_ready(out)

    ref = bert_attention_ref(x, params, num_heads=NUM_HEADS)
    assert out.shape == (B, S, H)
    # bf16 MXU inputs + bf16 EUP exp + approx reciprocal -> small drift vs f32 reference;
    # accumulation and the softmax denominator stay f32.
    assert jnp.allclose(out, ref, atol=5e-2, rtol=5e-2)

    print("KERNEL_OK")
</pallas_src>

<mosaic_0001>
module attributes {stable_mosaic.version = 11 : i64} {
  func.func @bert_attention_kernel(%arg0: i32, %arg1: i32, %arg2: memref<1x16x32xf32, #tpu.memory_space<vmem>>, %arg3: memref<32x32xbf16, #tpu.memory_space<vmem>>, %arg4: memref<32x32xbf16, #tpu.memory_space<vmem>>, %arg5: memref<32x32xbf16, #tpu.memory_space<vmem>>, %arg6: memref<32x32xbf16, #tpu.memory_space<vmem>>, %arg7: memref<8x32xf32, #tpu.memory_space<vmem>>, %arg8: memref<1x8x32xf32, #tpu.memory_space<vmem>>, %arg9: memref<4x16x8xbf16, #tpu.memory_space<vmem>>, %arg10: memref<4x16x8xbf16, #tpu.memory_space<vmem>>, %arg11: memref<4x8x8xbf16, #tpu.memory_space<vmem>>, %arg12: memref<4x8x8xbf16, #tpu.memory_space<vmem>>) attributes {dimension_semantics = [#tpu.dimension_semantics<parallel>, #tpu.dimension_semantics<arbitrary>], iteration_bounds = array<i64: 2, 2>, scalar_prefetch = 0 : i64, scratch_operands = 4 : i64, tpu.core_type = #tpu.core_type<tc>, window_params = [{transform_indices = @transform_0, window_bounds = array<i64: 1, 16, 32>}, {pipeline_mode = #tpu.pipeline_mode<synchronous>, transform_indices = @transform_1, window_bounds = array<i64: 32, 32>}, {pipeline_mode = #tpu.pipeline_mode<synchronous>, transform_indices = @transform_2, window_bounds = array<i64: 32, 32>}, {pipeline_mode = #tpu.pipeline_mode<synchronous>, transform_indices = @transform_3, window_bounds = array<i64: 32, 32>}, {pipeline_mode = #tpu.pipeline_mode<synchronous>, transform_indices = @transform_4, window_bounds = array<i64: 32, 32>}, {pipeline_mode = #tpu.pipeline_mode<synchronous>, transform_indices = @transform_5, window_bounds = array<i64: 8, 32>}, {transform_indices = @transform_6, window_bounds = array<i64: 1, 8, 32>}]} {
    %c0 = arith.constant 0 : index
    %c0_0 = arith.constant 0 : index
    %0 = vector.load %arg7[%c0, %c0_0] : memref<8x32xf32, #tpu.memory_space<vmem>>, vector<8x32xf32>
    %1 = vector.extract_strided_slice %0 {offsets = [0, 0], sizes = [1, 32], strides = [1, 1]} : vector<8x32xf32> to vector<1x32xf32>
    %2 = vector.extract_strided_slice %0 {offsets = [1, 0], sizes = [1, 32], strides = [1, 1]} : vector<8x32xf32> to vector<1x32xf32>
    %3 = vector.extract_strided_slice %0 {offsets = [2, 0], sizes = [1, 32], strides = [1, 1]} : vector<8x32xf32> to vector<1x32xf32>
    %4 = vector.extract_strided_slice %0 {offsets = [3, 0], sizes = [1, 32], strides = [1, 1]} : vector<8x32xf32> to vector<1x32xf32>
    %5 = vector.extract_strided_slice %0 {offsets = [4, 0], sizes = [1, 32], strides = [1, 1]} : vector<8x32xf32> to vector<1x32xf32>
    %6 = vector.extract_strided_slice %0 {offsets = [5, 0], sizes = [1, 32], strides = [1, 1]} : vector<8x32xf32> to vector<1x32xf32>
    %c0_i32 = arith.constant 0 : i32
    %7 = arith.cmpi eq, %arg1, %c0_i32 : i32
    %8 = arith.extui %7 : i1 to i32
    %c0_i32_1 = arith.constant 0 : i32
    %9 = arith.cmpi ne, %8, %c0_i32_1 : i32
    scf.if %9 {
      %c0_41 = arith.constant 0 : index
      %c0_42 = arith.constant 0 : index
      %c0_43 = arith.constant 0 : index
      %82 = vector.load %arg2[%c0_41, %c0_42, %c0_43] : memref<1x16x32xf32, #tpu.memory_space<vmem>>, vector<1x16x32xf32>
      %83 = vector.shape_cast %82 : vector<1x16x32xf32> to vector<16x32xf32>
      %84 = arith.truncf %83 : vector<16x32xf32> to vector<16x32xbf16>
      %c0_44 = arith.constant 0 : index
      %c0_45 = arith.constant 0 : index
      %85 = vector.load %arg4[%c0_44, %c0_45] : memref<32x32xbf16, #tpu.memory_space<vmem>>, vector<32x32xbf16>
      %cst_46 = arith.constant dense<0.000000e+00> : vector<16x32xf32>
      %86 = tpu.matmul %84, %85, %cst_46 {dimension_numbers = #tpu.dot_dimension_numbers<[1], [0], [0], [1], [0, 0, 1, 1], [], []>} : vector<16x32xbf16>, vector<32x32xbf16>, vector<16x32xf32> -> vector<16x32xf32>
      %87 = vector.broadcast %2 : vector<1x32xf32> to vector<16x32xf32>
      %88 = arith.addf %86, %87 : vector<16x32xf32>
      %c0_47 = arith.constant 0 : index
      %c0_48 = arith.constant 0 : index
      %89 = vector.load %arg5[%c0_47, %c0_48] : memref<32x32xbf16, #tpu.memory_space<vmem>>, vector<32x32xbf16>
      %cst_49 = arith.constant dense<0.000000e+00> : vector<16x32xf32>
      %90 = tpu.matmul %84, %89, %cst_49 {dimension_numbers = #tpu.dot_dimension_numbers<[1], [0], [0], [1], [0, 0, 1, 1], [], []>} : vector<16x32xbf16>, vector<32x32xbf16>, vector<16x32xf32> -> vector<16x32xf32>
      %91 = vector.broadcast %3 : vector<1x32xf32> to vector<16x32xf32>
      %92 = arith.addf %90, %91 : vector<16x32xf32>
      %93 = vector.extract_strided_slice %88 {offsets = [0, 0], sizes = [16, 8], strides = [1, 1]} : vector<16x32xf32> to vector<16x8xf32>
      %94 = arith.truncf %93 : vector<16x8xf32> to vector<16x8xbf16>
      %c0_50 = arith.constant 0 : index
      %c0_51 = arith.constant 0 : index
      %c0_52 = arith.constant 0 : index
      %95 = vector.load %arg9[%c0_50, %c0_51, %c0_52] : memref<4x16x8xbf16, #tpu.memory_space<vmem>>, vector<1x16x8xbf16>
      %96 = vector.shape_cast %95 : vector<1x16x8xbf16> to vector<16x8xbf16>
      %97 = vector.shape_cast %94 : vector<16x8xbf16> to vector<1x16x8xbf16>
      tpu.vector_store %arg9[%c0_50, %c0_51, %c0_52], %97 {strides = array<i32>} : memref<4x16x8xbf16, #tpu.memory_space<vmem>>, vector<1x16x8xbf16>,
      %98 = vector.extract_strided_slice %92 {offsets = [0, 0], sizes = [16, 8], strides = [1, 1]} : vector<16x32xf32> to vector<16x8xf32>
      %99 = arith.truncf %98 : vector<16x8xf32> to vector<16x8xbf16>
      %c0_53 = arith.constant 0 : index
      %c0_54 = arith.constant 0 : index
      %c0_55 = arith.constant 0 : index
      %100 = vector.load %arg10[%c0_53, %c0_54, %c0_55] : memref<4x16x8xbf16, #tpu.memory_space<vmem>>, vector<1x16x8xbf16>
      %101 = vector.shape_cast %100 : vector<1x16x8xbf16> to vector<16x8xbf16>
      %102 = vector.shape_cast %99 : vector<16x8xbf16> to vector<1x16x8xbf16>
      tpu.vector_store %arg10[%c0_53, %c0_54, %c0_55], %102 {strides = array<i32>} : memref<4x16x8xbf16, #tpu.memory_space<vmem>>, vector<1x16x8xbf16>,
      %103 = vector.extract_strided_slice %88 {offsets = [0, 8], sizes = [16, 8], strides = [1, 1]} : vector<16x32xf32> to vector<16x8xf32>
      %104 = arith.truncf %103 : vector<16x8xf32> to vector<16x8xbf16>
      %c1_56 = arith.constant 1 : index
      %c0_57 = arith.constant 0 : index
      %c0_58 = arith.constant 0 : index
      %105 = vector.load %arg9[%c1_56, %c0_57, %c0_58] : memref<4x16x8xbf16, #tpu.memory_space<vmem>>, vector<1x16x8xbf16>
      %106 = vector.shape_cast %105 : vector<1x16x8xbf16> to vector<16x8xbf16>
      %107 = vector.shape_cast %104 : vector<16x8xbf16> to vector<1x16x8xbf16>
      tpu.vector_store %arg9[%c1_56, %c0_57, %c0_58], %107 {strides = array<i32>} : memref<4x16x8xbf16, #tpu.memory_space<vmem>>, vector<1x16x8xbf16>,
      %108 = vector.extract_strided_slice %92 {offsets = [0, 8], sizes = [16, 8], strides = [1, 1]} : vector<16x32xf32> to vector<16x8xf32>
      %109 = arith.truncf %108 : vector<16x8xf32> to vector<16x8xbf16>
      %c1_59 = arith.constant 1 : index
      %c0_60 = arith.constant 0 : index
      %c0_61 = arith.constant 0 : index
      %110 = vector.load %arg10[%c1_59, %c0_60, %c0_61] : memref<4x16x8xbf16, #tpu.memory_space<vmem>>, vector<1x16x8xbf16>
      %111 = vector.shape_cast %110 : vector<1x16x8xbf16> to vector<16x8xbf16>
      %112 = vector.shape_cast %109 : vector<16x8xbf16> to vector<1x16x8xbf16>
      tpu.vector_store %arg10[%c1_59, %c0_60, %c0_61], %112 {strides = array<i32>} : memref<4x16x8xbf16, #tpu.memory_space<vmem>>, vector<1x16x8xbf16>,
      %113 = vector.extract_strided_slice %88 {offsets = [0, 16], sizes = [16, 8], strides = [1, 1]} : vector<16x32xf32> to vector<16x8xf32>
      %114 = arith.truncf %113 : vector<16x8xf32> to vector<16x8xbf16>
      %c2_62 = arith.constant 2 : index
      %c0_63 = arith.constant 0 : index
      %c0_64 = arith.constant 0 : index
      %115 = vector.load %arg9[%c2_62, %c0_63, %c0_64] : memref<4x16x8xbf16, #tpu.memory_space<vmem>>, vector<1x16x8xbf16>
      %116 = vector.shape_cast %115 : vector<1x16x8xbf16> to vector<16x8xbf16>
      %117 = vector.shape_cast %114 : vector<16x8xbf16> to vector<1x16x8xbf16>
      tpu.vector_store %arg9[%c2_62, %c0_63, %c0_64], %117 {strides = array<i32>} : memref<4x16x8xbf16, #tpu.memory_space<vmem>>, vector<1x16x8xbf16>,
      %118 = vector.extract_strided_slice %92 {offsets = [0, 16], sizes = [16, 8], strides = [1, 1]} : vector<16x32xf32> to vector<16x8xf32>
      %119 = arith.truncf %118 : vector<16x8xf32> to vector<16x8xbf16>
      %c2_65 = arith.constant 2 : index
      %c0_66 = arith.constant 0 : index
      %c0_67 = arith.constant 0 : index
      %120 = vector.load %arg10[%c2_65, %c0_66, %c0_67] : memref<4x16x8xbf16, #tpu.memory_space<vmem>>, vector<1x16x8xbf16>
      %121 = vector.shape_cast %120 : vector<1x16x8xbf16> to vector<16x8xbf16>
      %122 = vector.shape_cast %119 : vector<16x8xbf16> to vector<1x16x8xbf16>
      tpu.vector_store %arg10[%c2_65, %c0_66, %c0_67], %122 {strides = array<i32>} : memref<4x16x8xbf16, #tpu.memory_space<vmem>>, vector<1x16x8xbf16>,
      %123 = vector.extract_strided_slice %88 {offsets = [0, 24], sizes = [16, 8], strides = [1, 1]} : vector<16x32xf32> to vector<16x8xf32>
      %124 = arith.truncf %123 : vector<16x8xf32> to vector<16x8xbf16>
      %c3_68 = arith.constant 3 : index
      %c0_69 = arith.constant 0 : index
      %c0_70 = arith.constant 0 : index
      %125 = vector.load %arg9[%c3_68, %c0_69, %c0_70] : memref<4x16x8xbf16, #tpu.memory_space<vmem>>, vector<1x16x8xbf16>
      %126 = vector.shape_cast %125 : vector<1x16x8xbf16> to vector<16x8xbf16>
      %127 = vector.shape_cast %124 : vector<16x8xbf16> to vector<1x16x8xbf16>
      tpu.vector_store %arg9[%c3_68, %c0_69, %c0_70], %127 {strides = array<i32>} : memref<4x16x8xbf16, #tpu.memory_space<vmem>>, vector<1x16x8xbf16>,
      %128 = vector.extract_strided_slice %92 {offsets = [0, 24], sizes = [16, 8], strides = [1, 1]} : vector<16x32xf32> to vector<16x8xf32>
      %129 = arith.truncf %128 : vector<16x8xf32> to vector<16x8xbf16>
      %c3_71 = arith.constant 3 : index
      %c0_72 = arith.constant 0 : index
      %c0_73 = arith.constant 0 : index
      %130 = vector.load %arg10[%c3_71, %c0_72, %c0_73] : memref<4x16x8xbf16, #tpu.memory_space<vmem>>, vector<1x16x8xbf16>
      %131 = vector.shape_cast %130 : vector<1x16x8xbf16> to vector<16x8xbf16>
      %132 = vector.shape_cast %129 : vector<16x8xbf16> to vector<1x16x8xbf16>
      tpu.vector_store %arg10[%c3_71, %c0_72, %c0_73], %132 {strides = array<i32>} : memref<4x16x8xbf16, #tpu.memory_space<vmem>>, vector<1x16x8xbf16>,
    } else {
    }
    %c8_i32 = arith.constant 8 : i32
    %10 = arith.muli %arg1, %c8_i32 : i32
    %11 = tpu.assume_multiple %10, 8 : i32
    %c0_2 = arith.constant 0 : index
    %12 = arith.index_cast %11 : i32 to index
    %c0_3 = arith.constant 0 : index
    %13 = vector.load %arg2[%c0_2, %12, %c0_3] : memref<1x16x32xf32, #tpu.memory_space<vmem>>, vector<1x8x32xf32>
    %14 = vector.shape_cast %13 : vector<1x8x32xf32> to vector<8x32xf32>
    %15 = arith.truncf %14 : vector<8x32xf32> to vector<8x32xbf16>
    %c0_4 = arith.constant 0 : index
    %c0_5 = arith.constant 0 : index
    %16 = vector.load %arg3[%c0_4, %c0_5] : memref<32x32xbf16, #tpu.memory_space<vmem>>, vector<32x32xbf16>
    %cst = arith.constant dense<0.000000e+00> : vector<8x32xf32>
    %17 = tpu.matmul %15, %16, %cst {dimension_numbers = #tpu.dot_dimension_numbers<[1], [0], [0], [1], [0, 0, 1, 1], [], []>} : vector<8x32xbf16>, vector<32x32xbf16>, vector<8x32xf32> -> vector<8x32xf32>
    %18 = vector.broadcast %1 : vector<1x32xf32> to vector<8x32xf32>
    %19 = arith.addf %17, %18 : vector<8x32xf32>
    %cst_6 = arith.constant 0.353553385 : f32
    %20 = vector.broadcast %cst_6 : f32 to vector<8x32xf32>
    %21 = arith.mulf %19, %20 : vector<8x32xf32>
    %22 = vector.extract_strided_slice %21 {offsets = [0, 0], sizes = [8, 8], strides = [1, 1]} : vector<8x32xf32> to vector<8x8xf32>
    %23 = arith.truncf %22 : vector<8x8xf32> to vector<8x8xbf16>
    %c0_7 = arith.constant 0 : index
    %c0_8 = arith.constant 0 : index
    %c0_9 = arith.constant 0 : index
    %24 = vector.load %arg11[%c0_7, %c0_8, %c0_9] : memref<4x8x8xbf16, #tpu.memory_space<vmem>>, vector<1x8x8xbf16>
    %25 = vector.shape_cast %24 : vector<1x8x8xbf16> to vector<8x8xbf16>
    %26 = vector.shape_cast %23 : vector<8x8xbf16> to vector<1x8x8xbf16>
    tpu.vector_store %arg11[%c0_7, %c0_8, %c0_9], %26 {strides = array<i32>} : memref<4x8x8xbf16, #tpu.memory_space<vmem>>, vector<1x8x8xbf16>,
    %27 = vector.extract_strided_slice %21 {offsets = [0, 8], sizes = [8, 8], strides = [1, 1]} : vector<8x32xf32> to vector<8x8xf32>
    %28 = arith.truncf %27 : vector<8x8xf32> to vector<8x8xbf16>
    %c1 = arith.constant 1 : index
    %c0_10 = arith.constant 0 : index
    %c0_11 = arith.constant 0 : index
    %29 = vector.load %arg11[%c1, %c0_10, %c0_11] : memref<4x8x8xbf16, #tpu.memory_space<vmem>>, vector<1x8x8xbf16>
    %30 = vector.shape_cast %29 : vector<1x8x8xbf16> to vector<8x8xbf16>
    %31 = vector.shape_cast %28 : vector<8x8xbf16> to vector<1x8x8xbf16>
    tpu.vector_store %arg11[%c1, %c0_10, %c0_11], %31 {strides = array<i32>} : memref<4x8x8xbf16, #tpu.memory_space<vmem>>, vector<1x8x8xbf16>,
    %32 = vector.extract_strided_slice %21 {offsets = [0, 16], sizes = [8, 8], strides = [1, 1]} : vector<8x32xf32> to vector<8x8xf32>
    %33 = arith.truncf %32 : vector<8x8xf32> to vector<8x8xbf16>
    %c2 = arith.constant 2 : index
    %c0_12 = arith.constant 0 : index
    %c0_13 = arith.constant 0 : index
    %34 = vector.load %arg11[%c2, %c0_12, %c0_13] : memref<4x8x8xbf16, #tpu.memory_space<vmem>>, vector<1x8x8xbf16>
    %35 = vector.shape_cast %34 : vector<1x8x8xbf16> to vector<8x8xbf16>
    %36 = vector.shape_cast %33 : vector<8x8xbf16> to vector<1x8x8xbf16>
    tpu.vector_store %arg11[%c2, %c0_12, %c0_13], %36 {strides = array<i32>} : memref<4x8x8xbf16, #tpu.memory_space<vmem>>, vector<1x8x8xbf16>,
    %37 = vector.extract_strided_slice %21 {offsets = [0, 24], sizes = [8, 8], strides = [1, 1]} : vector<8x32xf32> to vector<8x8xf32>
    %38 = arith.truncf %37 : vector<8x8xf32> to vector<8x8xbf16>
    %c3 = arith.constant 3 : index
    %c0_14 = arith.constant 0 : index
    %c0_15 = arith.constant 0 : index
    %39 = vector.load %arg11[%c3, %c0_14, %c0_15] : memref<4x8x8xbf16, #tpu.memory_space<vmem>>, vector<1x8x8xbf16>
    %40 = vector.shape_cast %39 : vector<1x8x8xbf16> to vector<8x8xbf16>
    %41 = vector.shape_cast %38 : vector<8x8xbf16> to vector<1x8x8xbf16>
    tpu.vector_store %arg11[%c3, %c0_14, %c0_15], %41 {strides = array<i32>} : memref<4x8x8xbf16, #tpu.memory_space<vmem>>, vector<1x8x8xbf16>,
    %c0_i32_16 = arith.constant 0 : i32
    %c4_i32 = arith.constant 4 : i32
    %42 = arith.addi %c0_i32_16, %c4_i32 : i32
    %c1_i32 = arith.constant 1 : i32
    scf.for %arg13 = %c0_i32_16 to %42 step %c1_i32  : i32 {
      %82 = arith.index_cast %arg13 : i32 to index
      %c0_41 = arith.constant 0 : index
      %c0_42 = arith.constant 0 : index
      %83 = vector.load %arg11[%82, %c0_41, %c0_42] : memref<4x8x8xbf16, #tpu.memory_space<vmem>>, vector<1x8x8xbf16>
      %84 = vector.shape_cast %83 : vector<1x8x8xbf16> to vector<8x8xbf16>
      %85 = arith.index_cast %arg13 : i32 to index
      %c0_43 = arith.constant 0 : index
      %c0_44 = arith.constant 0 : index
      %86 = vector.load %arg9[%85, %c0_43, %c0_44] : memref<4x16x8xbf16, #tpu.memory_space<vmem>>, vector<1x16x8xbf16>
      %87 = vector.shape_cast %86 : vector<1x16x8xbf16> to vector<16x8xbf16>
      %88 = arith.index_cast %arg13 : i32 to index
      %c0_45 = arith.constant 0 : index
      %c0_46 = arith.constant 0 : index
      %89 = vector.load %arg10[%88, %c0_45, %c0_46] : memref<4x16x8xbf16, #tpu.memory_space<vmem>>, vector<1x16x8xbf16>
      %90 = vector.shape_cast %89 : vector<1x16x8xbf16> to vector<16x8xbf16>
      %cst_47 = arith.constant dense<0.000000e+00> : vector<8x16xf32>
      %91 = tpu.matmul %84, %87, %cst_47 {dimension_numbers = #tpu.dot_dimension_numbers<[1], [1], [0], [0], [0, 0, 1, 0], [], []>} : vector<8x8xbf16>, vector<16x8xbf16>, vector<8x16xf32> -> vector<8x16xf32>
      %cst_48 = arith.constant dense<0xFF800000> : vector<8xf32>
      %92 = vector.multi_reduction <maximumf>, %91, %cst_48 [1] : vector<8x16xf32> to vector<8xf32>
      %93 = vector.shape_cast %92 : vector<8xf32> to vector<8x1xf32>
      %94 = vector.broadcast %93 : vector<8x1xf32> to vector<8x16xf32>
      %95 = arith.subf %91, %94 : vector<8x16xf32>
      %96 = arith.truncf %95 : vector<8x16xf32> to vector<8x16xbf16>
      %97 = math.exp %96 : vector<8x16xbf16>
      %98 = arith.extf %97 : vector<8x16xbf16> to vector<8x16xf32>
      %cst_49 = arith.constant dense<0.000000e+00> : vector<8xf32>
      %99 = vector.multi_reduction <add>, %98, %cst_49 [1] : vector<8x16xf32> to vector<8xf32>
      %100 = vector.shape_cast %99 : vector<8xf32> to vector<8x1xf32>
      %101 = tpu.reciprocal %100 {approx = true} : vector<8x1xf32> -> vector<8x1xf32>
      %cst_50 = arith.constant dense<0.000000e+00> : vector<8x8xf32>
      %102 = tpu.matmul %97, %90, %cst_50 {dimension_numbers = #tpu.dot_dimension_numbers<[1], [0], [0], [1], [0, 0, 1, 1], [], []>} : vector<8x16xbf16>, vector<16x8xbf16>, vector<8x8xf32> -> vector<8x8xf32>
      %103 = vector.broadcast %101 : vector<8x1xf32> to vector<8x8xf32>
      %104 = arith.mulf %102, %103 : vector<8x8xf32>
      %105 = arith.truncf %104 : vector<8x8xf32> to vector<8x8xbf16>
      %106 = arith.index_cast %arg13 : i32 to index
      %c0_51 = arith.constant 0 : index
      %c0_52 = arith.constant 0 : index
      %107 = vector.load %arg12[%106, %c0_51, %c0_52] : memref<4x8x8xbf16, #tpu.memory_space<vmem>>, vector<1x8x8xbf16>
      %108 = vector.shape_cast %107 : vector<1x8x8xbf16> to vector<8x8xbf16>
      %109 = vector.shape_cast %105 : vector<8x8xbf16> to vector<1x8x8xbf16>
      tpu.vector_store %arg12[%106, %c0_51, %c0_52], %109 {strides = array<i32>} : memref<4x8x8xbf16, #tpu.memory_space<vmem>>, vector<1x8x8xbf16>,
    }
    %c4_i32_17 = arith.constant 4 : i32
    %c0_18 = arith.constant 0 : index
    %c0_19 = arith.constant 0 : index
    %c0_20 = arith.constant 0 : index
    %43 = vector.load %arg12[%c0_18, %c0_19, %c0_20] : memref<4x8x8xbf16, #tpu.memory_space<vmem>>, vector<1x8x8xbf16>
    %44 = vector.shape_cast %43 : vector<1x8x8xbf16> to vector<8x8xbf16>
    %c1_21 = arith.constant 1 : index
    %c0_22 = arith.constant 0 : index
    %c0_23 = arith.constant 0 : index
    %45 = vector.load %arg12[%c1_21, %c0_22, %c0_23] : memref<4x8x8xbf16, #tpu.memory_space<vmem>>, vector<1x8x8xbf16>
    %46 = vector.shape_cast %45 : vector<1x8x8xbf16> to vector<8x8xbf16>
    %c2_24 = arith.constant 2 : index
    %c0_25 = arith.constant 0 : index
    %c0_26 = arith.constant 0 : index
    %47 = vector.load %arg12[%c2_24, %c0_25, %c0_26] : memref<4x8x8xbf16, #tpu.memory_space<vmem>>, vector<1x8x8xbf16>
    %48 = vector.shape_cast %47 : vector<1x8x8xbf16> to vector<8x8xbf16>
    %c3_27 = arith.constant 3 : index
    %c0_28 = arith.constant 0 : index
    %c0_29 = arith.constant 0 : index
    %49 = vector.load %arg12[%c3_27, %c0_28, %c0_29] : memref<4x8x8xbf16, #tpu.memory_space<vmem>>, vector<1x8x8xbf16>
    %50 = vector.shape_cast %49 : vector<1x8x8xbf16> to vector<8x8xbf16>
    %51 = tpu.concatenate %44, %46, %48, %50 in 1 : vector<8x8xbf16>, vector<8x8xbf16>, vector<8x8xbf16>, vector<8x8xbf16> -> vector<8x32xbf16>
    %c0_30 = arith.constant 0 : index
    %c0_31 = arith.constant 0 : index
    %52 = vector.load %arg6[%c0_30, %c0_31] : memref<32x32xbf16, #tpu.memory_space<vmem>>, vector<32x32xbf16>
    %cst_32 = arith.constant dense<0.000000e+00> : vector<8x32xf32>
    %53 = tpu.matmul %51, %52, %cst_32 {dimension_numbers = #tpu.dot_dimension_numbers<[1], [0], [0], [1], [0, 0, 1, 1], [], []>} : vector<8x32xbf16>, vector<32x32xbf16>, vector<8x32xf32> -> vector<8x32xf32>
    %54 = vector.broadcast %4 : vector<1x32xf32> to vector<8x32xf32>
    %55 = arith.addf %53, %54 : vector<8x32xf32>
    %56 = arith.addf %14, %55 : vector<8x32xf32>
    %cst_33 = arith.constant dense<0.000000e+00> : vector<8xf32>
    %57 = vector.multi_reduction <add>, %56, %cst_33 [1] : vector<8x32xf32> to vector<8xf32>
    %58 = vector.shape_cast %57 : vector<8xf32> to vector<8x1xf32>
    %cst_34 = arith.constant 3.200000e+01 : f32
    %59 = vector.broadcast %cst_34 : f32 to vector<8x1xf32>
    %60 = arith.divf %58, %59 : vector<8x1xf32>
    %61 = vector.broadcast %60 : vector<8x1xf32> to vector<8x32xf32>
    %62 = arith.subf %56, %61 : vector<8x32xf32>
    %63 = arith.mulf %62, %62 : vector<8x32xf32>
    %cst_35 = arith.constant dense<0.000000e+00> : vector<8xf32>
    %64 = vector.multi_reduction <add>, %63, %cst_35 [1] : vector<8x32xf32> to vector<8xf32>
    %65 = vector.shape_cast %64 : vector<8xf32> to vector<8x1xf32>
    %cst_36 = arith.constant 3.200000e+01 : f32
    %66 = vector.broadcast %cst_36 : f32 to vector<8x1xf32>
    %67 = arith.divf %65, %66 : vector<8x1xf32>
    %68 = vector.broadcast %60 : vector<8x1xf32> to vector<8x32xf32>
    %69 = arith.subf %56, %68 : vector<8x32xf32>
    %cst_37 = arith.constant 9.99999974E-6 : f32
    %70 = vector.broadcast %cst_37 : f32 to vector<8x1xf32>
    %71 = arith.addf %67, %70 : vector<8x1xf32>
    %72 = math.rsqrt %71 : vector<8x1xf32>
    %73 = vector.broadcast %72 : vector<8x1xf32> to vector<8x32xf32>
    %74 = arith.mulf %69, %73 : vector<8x32xf32>
    %75 = vector.broadcast %5 : vector<1x32xf32> to vector<8x32xf32>
    %76 = arith.mulf %74, %75 : vector<8x32xf32>
    %77 = vector.broadcast %6 : vector<1x32xf32> to vector<8x32xf32>
    %78 = arith.addf %76, %77 : vector<8x32xf32>
    %c0_38 = arith.constant 0 : index
    %c0_39 = arith.constant 0 : index
    %c0_40 = arith.constant 0 : index
    %79 = vector.load %arg8[%c0_38, %c0_39, %c0_40] : memref<1x8x32xf32, #tpu.memory_space<vmem>>, vector<1x8x32xf32>
    %80 = vector.shape_cast %79 : vector<1x8x32xf32> to vector<8x32xf32>
    %81 = vector.shape_cast %78 : vector<8x32xf32> to vector<1x8x32xf32>
    tpu.vector_store %arg8[%c0_38, %c0_39, %c0_40], %81 {strides = array<i32>} : memref<1x8x32xf32, #tpu.memory_space<vmem>>, vector<1x8x32xf32>,
    return
  }
  func.func @transform_0(%arg0: i32, %arg1: i32) -> (i32, i32, i32) {
    %c0_i32 = arith.constant 0 : i32
    %c0_i32_0 = arith.constant 0 : i32
    %c0_i32_1 = arith.constant 0 : i32
    return %arg0, %c0_i32, %c0_i32_0 : i32, i32, i32
  }
  func.func @transform_1(%arg0: i32, %arg1: i32) -> (i32, i32) {
    %c0_i32 = arith.constant 0 : i32
    %c0_i32_0 = arith.constant 0 : i32
    %c0_i32_1 = arith.constant 0 : i32
    return %c0_i32, %c0_i32_0 : i32, i32
  }
  func.func @transform_2(%arg0: i32, %arg1: i32) -> (i32, i32) {
    %c0_i32 = arith.constant 0 : i32
    %c0_i32_0 = arith.constant 0 : i32
    %c0_i32_1 = arith.constant 0 : i32
    return %c0_i32, %c0_i32_0 : i32, i32
  }
  func.func @transform_3(%arg0: i32, %arg1: i32) -> (i32, i32) {
    %c0_i32 = arith.constant 0 : i32
    %c0_i32_0 = arith.constant 0 : i32
    %c0_i32_1 = arith.constant 0 : i32
    return %c0_i32, %c0_i32_0 : i32, i32
  }
  func.func @transform_4(%arg0: i32, %arg1: i32) -> (i32, i32) {
    %c0_i32 = arith.constant 0 : i32
    %c0_i32_0 = arith.constant 0 : i32
    %c0_i32_1 = arith.constant 0 : i32
    return %c0_i32, %c0_i32_0 : i32, i32
  }
  func.func @transform_5(%arg0: i32, %arg1: i32) -> (i32, i32) {
    %c0_i32 = arith.constant 0 : i32
    %c0_i32_0 = arith.constant 0 : i32
    %c0_i32_1 = arith.constant 0 : i32
    return %c0_i32, %c0_i32_0 : i32, i32
  }
  func.func @transform_6(%arg0: i32, %arg1: i32) -> (i32, i32, i32) {
    %c0_i32 = arith.constant 0 : i32
    %c0_i32_0 = arith.constant 0 : i32
    return %arg0, %arg1, %c0_i32 : i32, i32, i32
  }
}

</mosaic_0001>

<bundles_post_ra>
// kernel: tpu_custom_call.1
= control target key start
LH: loop header
LB: loop body
LE: loop exit
PB: predicated region body
PF: predicated region fallthrough
CT: control target
= control target key end

     0   :  { %s2040_s0 = inlined_call_operand.hbm [shape: f32[2,16,32], index: 0, kind: input, shape index: {}]   ;;  %s2041_s1 = inlined_call_operand.hbm [shape: bf16[32,32], index: 1, kind: input, shape index: {}]   ;;  %s2042_s2 = inlined_call_operand.hbm [shape: bf16[32,32], index: 2, kind: input, shape index: {}]   ;;  %s2043_s3 = inlined_call_operand.hbm [shape: bf16[32,32], index: 3, kind: input, shape index: {}]   ;;  %s2044_s4 = inlined_call_operand.hbm [shape: bf16[32,32], index: 4, kind: input, shape index: {}]   ;;  %s2045_s5 = inlined_call_operand.vmem [shape: f32[8,32], index: 5, kind: input, shape index: {}]   ;;  %s2046_s6 = inlined_call_operand.hbm [shape: f32[2,16,32], index: 6, kind: output, shape index: {}]  }
   0x1   :  { %2054 = sst [smem:[#allocation25_spill]] %s2041_s1 }
   0x2   :  { %2055 = sst [smem:[#allocation26_spill]] %s2042_s2 }
   0x3   :  { %2056 = sst [smem:[#allocation27_spill]] %s2043_s3 }
   0x4   :  { %2057 = sst [smem:[#allocation28_spill]] %s2044_s4 }
   0x5   :  { %2058 = sst [smem:[#allocation29_spill]] %s2046_s6 }
   0x6   :  { %11 = vsyncpa [#allocation7], 0 }
   0x7   :  { %13 = vsyncpa [#allocation7 + $0x1], 0 }
   0x8   :  { %14 = vsyncpa [#allocation10], 0 }
   0x9   :  { %15 = vsyncpa [#allocation13], 0 }
   0xa   :  { %16 = vsyncpa [#allocation8], 0 }
   0xb   :  { %18 = vsyncpa [#allocation8 + $0x1], 0  ;;  %s1693_s21 = smov 0   ;;  %s1695_s22 = smov 0  }
   0xc   :  { %s1697_s23 = smov 0   ;;  %s1699_s24 = smov 0  }
   0xd   :  { %s1701_s25 = smov 0   ;;  %s1703_s26 = smov 0  }
   0xe   :  { %s1705_s27 = smov 0   ;;  %s1707_s28 = smov 0  }
   0xf   :  { %s1709_s29 = smov 0   ;;  %s1711_s30 = smov 0  }
  0x10   :  { %s1713_s7 = smov 0  }
  0x11 LB: > { %2059 = sst [smem:[#allocation20_spill]] %s1587_s21  ;;  %s1052_s8 = sadd.s32 4294967295, %s1627_s7   ;;  %s1627_s7 = sphi %s1713_s7, %s24_s7   ;;  %s1623_s30 = sphi %s1711_s30, %s2090_s30   ;;  %s1619_s29 = sphi %s1709_s29, %s2082_s29   ;;  %s1615_s28 = sphi %s1707_s28, %s2089_s28   ;;  %s1611_s27 = sphi %s1705_s27, %s2081_s27   ;;  %s1607_s26 = sphi %s1703_s26, %s2088_s26   ;;  %s1603_s25 = sphi %s1701_s25, %s2087_s25   ;;  %s1599_s24 = sphi %s1699_s24, %s2086_s24   ;;  %s1595_s23 = sphi %s1697_s23, %s2085_s23   ;;  %s1591_s22 = sphi %s1695_s22, %s2084_s22   ;;  %s1587_s21 = sphi %s1693_s21, %s2083_s21  }
  0x12   : > { %2060 = sst [smem:[#allocation21_spill]] %s1619_s29  ;;  %s1053_s9 = sadd.s32 4294967294, %s1627_s7  }
  0x13   : > { %p56_p0 = scmp.ne.s32.totalorder %s1603_s25, %s1599_s24  ;;  %p1749_p1 = scmp.eq.s32.totalorder %s1052_s8, 0 }
  0x14   : > { %p186_p2 = scmp.ne.s32.totalorder %s1595_s23, %s1591_s22  ;;  %p187_p3 = scmp.eq.s32.totalorder %s1052_s8, 3 }
  0x15   : > { %p1757_p4 = por %p1749_p1, %p56_p0  ;;  %p192_p5 = scmp.ne.s32.totalorder %s1591_s22, %s1587_s21 }
  0x16   : > { %p1763_p6 = por %p187_p3, %p186_p2  ;;  %p193_p7 = scmp.eq.s32.totalorder %s1053_s9, 3 }
  0x17   : > { %p1054_p8 = scmp.ge.s32.totalorder %s1627_s7, 1  ;;  %p200_p9 = scmp.lt.s32.totalorder %s1627_s7, 5 }
  0x18   : > { %s2063_s12 = scalar_select %p1763_p6, 1, 0 }
  0x19   : > { %p1769_p10 = por %p193_p7, %p192_p5  ;;  %p1773_p11 = pnand %p1054_p8, %p200_p9 }
  0x1a   : > { %2064 = sst [smem:[#allocation22_spill]] %s2063_s12  ;;  %s1633_s15 = smov [#allocation9]  }
  0x1b   : > { %s2065_s13 = scalar_select %p1769_p10, 1, 0 }
  0x1c   : > { %s212_s16 = sshll.u32 %s1633_s15, 4  ;;  %p1194_p12 = pneg %p1773_p11  ;;  %s213_s16 = int_to_ptr.vmem [resolvable:$true] %s212_s16 }
  0x1d   : > { %2066 = sst [smem:[#allocation23_spill]] %s2065_s13  ;;  %s1634_s18 = smov [#allocation12]  }
  0x1e   : > { %p1781_p13 = pnand %p1194_p12, %p1749_p1  ;;  %s238_s19 = sshll.u32 %s1634_s18, 4  ;;  %s239_s19 = int_to_ptr.vmem [resolvable:$true] %s238_s19 }
  0x1f   : > { %s1374_s20 = scalar_lea.vmem %s213_s16, 256  ;;  %p1382_p7 = scmp.lt.s32.totalorder %s213_s16, %s213_s16 }
  0x20   : > { %p1365_p0 = pneg %p1781_p13  ;;  %p1375_p2 = scmp.ne.s32.totalorder %s213_s16, %s1374_s20 }
  0x21   : > { %p1383_p8 = scmp.lt.s32.totalorder %s1374_s20, %s1374_s20 }
  0x22   : > { %p1377_p3 = pnand %p1375_p2, %p1365_p0 }
  0x23   : > { %p1384_p9 = por %p1383_p8, %p1382_p7 }
  0x24   : > { %p1378_p5 = pneg %p1377_p3 }
  0x26   : > { %p1385_p12 = pnand %p1384_p9, %p1378_p5 }
  0x28   : > { %1388 = shalt.err (!%p1385_p12)
}
  0x29   : > { %s1635_s24 = smov 64   ;;  %s1636_s8 = smov 4  }
  0x2a   : > { %s2069_s1 = sld [smem:[#allocation25_spill]]  ;;  %s1400_s18 = scalar_lea.vmem %s239_s19, 256 }
  0x2b   : > { %p1401_p2 = scmp.ne.s32.totalorder %s239_s19, %s1400_s18  ;;  %p1408_p5 = scmp.lt.s32.totalorder %s239_s19, %s239_s19 }
  0x2c   : > { %p1409_p8 = scmp.lt.s32.totalorder %s1400_s18, %s1400_s18 }
  0x2d   : > { %p1403_p3 = pnand %p1401_p2, %p1365_p0 }
  0x2e   : > { %p1410_p9 = por %p1409_p8, %p1408_p5 }
  0x2f   : > { %p1404_p7 = pneg %p1403_p3 }
  0x30   : > { %1197 = dma.hbm_to_vmem [thread:$0]  (!%p1781_p13), %s2069_s1, 256, %s213_s16, [#allocation10], %s1635_s24, %s1635_s24, %s1636_s8  }
  0x31   : > { %p1411_p12 = pnand %p1410_p9, %p1404_p7 }
  0x33   : > { %1414 = shalt.err (!%p1411_p12)
}
  0x34   : > { %s2070_s3 = sld [smem:[#allocation27_spill]]  ;;  %s1637_s16 = smov [#allocation11]  }
  0x35   : > { %s225_s9 = sshll.u32 %s1637_s16, 4  ;;  %s1638_s15 = smov [#allocation14]   ;;  %s226_s9 = int_to_ptr.vmem [resolvable:$true] %s225_s9 }
  0x36   : > { %s251_s1 = sshll.u32 %s1638_s15, 4  ;;  %s1426_s21 = scalar_lea.vmem %s226_s9, 256  ;;  %s252_s1 = int_to_ptr.vmem [resolvable:$true] %s251_s1 }
  0x37   : > { %p1427_p2 = scmp.ne.s32.totalorder %s226_s9, %s1426_s21  ;;  %p1434_p5 = scmp.lt.s32.totalorder %s226_s9, %s226_s9 }
  0x38   : > { %p1435_p8 = scmp.lt.s32.totalorder %s1426_s21, %s1426_s21 }
  0x39   : > { %p1429_p3 = pnand %p1427_p2, %p1365_p0 }
  0x3a   : > { %1203 = dma.hbm_to_vmem [thread:$0]  (!%p1781_p13), %s2070_s3, 256, %s239_s19, [#allocation13], %s1635_s24, %s1635_s24, %s1636_s8  }
  0x3b   : > { %p1430_p7 = pneg %p1429_p3  ;;  %p1436_p9 = por %p1435_p8, %p1434_p5 }
  0x3d   : > { %p1437_p12 = pnand %p1436_p9, %p1430_p7 }
  0x3f   : > { %1440 = shalt.err (!%p1437_p12)
}
  0x40   : > { %s2071_s2 = sld [smem:[#allocation26_spill]]  ;;  %s1452_s18 = scalar_lea.vmem %s252_s1, 256 }
  0x41   : > { %p1453_p10 = scmp.ne.s32.totalorder %s252_s1, %s1452_s18  ;;  %p1460_p5 = scmp.lt.s32.totalorder %s252_s1, %s252_s1 }
  0x42   : > { %p1461_p7 = scmp.lt.s32.totalorder %s1452_s18, %s1452_s18 }
  0x43   : > { %p1455_p2 = pnand %p1453_p10, %p1365_p0 }
  0x44   : > { %p1462_p8 = por %p1461_p7, %p1460_p5 }
  0x45   : > { %p1456_p3 = pneg %p1455_p2 }
  0x46   : > { %1200 = dma.hbm_to_vmem [thread:$0]  (!%p1781_p13), %s2071_s2, 256, %s226_s9, [#allocation10], %s1635_s24, %s1635_s24, %s1636_s8  }
  0x47   : > { %p1463_p9 = pnand %p1462_p8, %p1456_p3 }
  0x49   : > { %1466 = shalt.err (!%p1463_p9)
}
  0x4a   : > { %s2072_s4 = sld [smem:[#allocation28_spill]]  ;;  %s33_s17 = sadd.s32 1, %s1619_s29 }
  0x4b   : > { %p34_p10 = scmp.ge.s32.totalorder %s33_s17, 2  ;;  %s36_s16 = sadd.s32 1, %s1623_s30 }
  0x4c   : > { %s43_s9 = sadd.s32 1, %s1607_s26  ;;  %p50_p0 = scmp.ne.s32.totalorder %s1607_s26, %s1603_s25 }
  0x4d   : > { %s2092_s17 = smov (%p34_p10, %s33_s17), 0  ;;  %s2094_s16 = smov (!%p34_p10, %s36_s16), %s1623_s30 }
  0x4e   : > { %2073 = sst [smem:[#allocation24_spill]] %s2092_s17  ;;  %p51_p12 = scmp.eq.s32.totalorder %s1627_s7, 0 }
  0x4f   : > { %s172_s15 = ssub.s32 %s1619_s29, %s2092_s17  ;;  %p38_p2 = scmp.ge.s32.totalorder %s2094_s16, 2 }
  0x50   : > { %1206 = dma.hbm_to_vmem [thread:$0]  (!%p1781_p13), %s2072_s4, 256, %s252_s1, [#allocation13], %s1635_s24, %s1635_s24, %s1636_s8  }
  0x51   : > { %s176_s13 = sadd.s32 1, %s1595_s23  ;;  %p1843_p3 = por %p51_p12, %p50_p0 }
  0x52   : > { %p1219_p13 = scmp.lt.s32.totalorder %s1627_s7, 4  ;;  %s2096_s16 = smov (%p38_p2, %s2094_s16), 0 }
  0x53   : > { %s268_s24 = sand.u32 1, %s1607_s26   ;;  %s1106_s8 = sshll.u32 %s1623_s30, 8 }
  0x54   : > { %s40_s19 = ssub.s32 %s1623_s30, %s2096_s16  ;;  %s1060_s21 = sshll.u32 %s268_s24, 4 }
  0x55   : > { %p41_p5 = scmp.eq.s32.totalorder %s40_s19, 0  ;;  %s173_s18 = sor.u32 %s172_s15, %s40_s19 }
  0x56   : > { %p174_p7 = scmp.eq.s32.totalorder %s173_s18, 0  ;;  %s278_s17 = scalar_lea.hbm %s2040_s0, %s1106_s8 }
  0x57   : > { %s1855_s20 = scalar_select %p41_p5, %s1607_s26, %s43_s9  }
  0x58   : > { %s1858_s2 = scalar_select %p174_p7, %s1595_s23, %s176_s13  }
  0x59   : > { %s272_s29 = scalar_lea.vmem [#allocation6], %s1060_s21  ;;  %p1867_p8 = pnand %p1219_p13, %p1843_p3 }
  0x5a   : > { %s279_s6 = sshll.u32 %s272_s29, 4  ;;  %s269_s15 = scalar_lea.sflag [#allocation7], %s268_s24  ;;  %s280_s6 = int_to_ptr.vmem [resolvable:$true] %s279_s6 }
  0x5b   : > { %p1469_p9 = pneg %p1867_p8  ;;  %s1480_s9 = scalar_lea.vmem %s280_s6, 256 }
  0x5c   : > { %p1481_p10 = scmp.ne.s32.totalorder %s280_s6, %s1480_s9  ;;  %s1639_s13 = smov [#allocation6]  }
  0x5d   : > { %s1485_s3 = sshll.u32 %s1639_s13, 4  ;;  %s1486_s3 = int_to_ptr.vmem [resolvable:$false] %s1485_s3 }
  0x5e   : > { %p1483_p0 = pnand %p1481_p10, %p1469_p9  ;;  %s1487_s4 = scalar_lea.vmem %s1486_s3, 512 }
  0x5f   : > { %p1488_p2 = scmp.lt.s32.totalorder %s280_s6, %s1486_s3  ;;  %p1489_p5 = scmp.lt.s32.totalorder %s1487_s4, %s1480_s9 }
  0x60   : > { %p1484_p12 = pneg %p1483_p0 }
  0x61   : > { %p1490_p7 = por %p1489_p5, %p1488_p2 }
  0x63   : > { %p1491_p3 = pnand %p1490_p7, %p1484_p12 }
  0x65   : > { %1494 = shalt.err (!%p1491_p3)
}
  0x66   : > { %s1640_s29 = smov 128   ;;  %s1641_s1 = smov 8  }
  0x67   : > { %1210 = dma.hbm_to_vmem [thread:$0]  (!%p1867_p8), %s278_s17, 256, %s280_s6, %s269_s15, %s1640_s29, %s1640_s29, %s1641_s1  }
  0x68   : > { %291 = sbr.rel (%p1773_p11) target bundleno = 2000 (0x7d0), region = 44  ;;  %s293_s24 = sand.u32 (!%p1773_p11), 1, %s1603_s25  }
  0x69   : > { %s1064_s8 = sshll.u32 (!%p1773_p11), %s293_s24, 4  ;;  %s294_s19 = scalar_lea.sflag (!%p1773_p11), [#allocation7], %s293_s24 }
  0x6a   : > { %s1878_s18 = scalar_lea.vmem (!%p1773_p11), [#allocation6], %s1064_s8 }
  0x6d   : > { %1570 = dma.done.wait (%p1757_p4), %s294_s19, 256  }
  0x6e   : > { %1572 = vsyncadd (%p1757_p4), %s294_s19, 4294967040 }
  0x6f   : > { %1574 = dma.done.wait (%p1749_p1), [#allocation10], 512  }
  0x70   : > { %1576 = vsyncadd (%p1749_p1), [#allocation10], 4294966784 }
  0x71   : > { %1578 = dma.done.wait (%p1749_p1), [#allocation13], 512  }
  0x72   : > { %1580 = vsyncadd (%p1749_p1), [#allocation13], 4294966784  ;;  %s339_s6 = sand.u32 1, %s1591_s22   ;;  %v1900_v0 = vld [vmem:[%s2045_s5] sm:$0xff]  ;;  %p1070_p4 = scmp.ne.s32.totalorder %s1611_s27, 0 }
  0x73   : > { %s1895_s12 = sshll.u32 %s339_s6, 3  ;;  %s1644_s10 = smov (!%p1070_p4), 120  }
  0x74   : > { %s341_s17 = scalar_lea.vmem [#allocation15], %s1895_s12  ;;  %347 = sbr.rel (%p1070_p4) target bundleno = 464 (0x1d0), region = 68 }
  0x75   : > { %s1645_s21 = smov (!%p1070_p4), 112   ;;  %s1646_s15 = smov (!%p1070_p4), 104  }
  0x79   : > { %v1344_v1 = vld [vmem:[#allocation11 + $0x8] sm:$0xff]   ;;  %v1642_v2 = vmov 0.0   ;;  %v1345_v3 = vld [vmem:[#allocation12 + $0x8] sm:$0xff]   ;;  %v1346_v4 = vld [vmem:[#allocation11] sm:$0xff]   ;;  %vm1643_vm0 = vmmov 0   ;;  %vm371_vm1 = vcmask 261120   ;;  %v355_v9 = vlaneseq }
  0x7a   : > { %1130 = vmatprep.subr.bf16.mxu0 %v1642_v2  ;;  %1138 = vmatprep.subr.bf16.mxu1 %v1642_v2  ;;  %v1347_v5 = vld [vmem:[#allocation12] sm:$0xff]   ;;  %v349_v7 = vld [vmem:[%s1878_s18 + $0x8] sm:$0xff]  ;;  %vm485_vm2 = vcmask 60416  }
  0x7b   : > { %1131 = vmatpush3.bf16.msra.mxu0 %v1344_v1  ;;  %1134 = vmatprep.mubr.msk.bf16.mxu0 %vm1643_vm0, %v1642_v2  ;;  %v348_v6 = vld [vmem:[%s1878_s18] sm:$0xff]  ;;  %v356_v10 = vshrl.u32 %v355_v9, 7 }
  0x7c   : > { %1139 = vmatpush3.bf16.msra.mxu1 %v1345_v3  ;;  %1132 = vmatprep.subr.bf16.mxu0 %v1642_v2  ;;  %v350_v8 = vpack.c.bf16 %v349_v7, %v348_v6 }
  0x7d   : > { %1140 = vmatprep.subr.bf16.mxu1 %v1642_v2  ;;  %1142 = vmatprep.mubr.msk.bf16.mxu1 %vm1643_vm0, %v1642_v2  ;;  %v357_v11 = vsub.s32 1, %v356_v10  ;;  %v422_v12 = vsub.s32 2, %v356_v10 }
  0x7f   : > { %1133 = vmatpush3.bf16.msra.mxu0 %v1346_v4  ;;  %v358_v13 = vrot.slane %v1900_v0, %v357_v11  ;;  %v423_v14 = vrot.slane %v1900_v0, %v422_v12 }
  0x80   : > { %1141 = vmatpush3.bf16.msra.mxu1 %v1347_v5 }
  0x82   : > { %1135 = vmatmul.mubr.msk.bf16.vlgmr.msra.gmra.mxu0 %vm371_vm1, %v350_v8 }
  0x83   : > { %1143 = vmatmul.mubr.msk.bf16.vlgmr.msra.gmra.mxu1 %vm371_vm1, %v350_v8 }
 0x142   : > { %v409_v15 = vpop.f32.mrf.mxu0 }
 0x143   : > { %v410_v16 = vadd.f32 %v409_v15, %v358_v13  ;;  %v470_v17 = vpop.f32.mrf.mxu1 }
 0x144   : > { %v471_v18 = vadd.f32 %v470_v17, %v423_v14  ;;  %v1136_v19 = vpop.f32.mrf.mxu0 }
 0x145   : > { %v1107_v20 = vpack.c.bf16 %v410_v16, %v410_v16  ;;  %v1144_v21 = vpop.f32.mrf.mxu1 }
 0x146   : > { %v1109_v22 = vpack.c.bf16 %v471_v18, %v471_v18  ;;  %v412_v23 = vpop.f32.mrf.mxu0 }
 0x147   : > { %486 = vst.msk [vmem:[#allocation2] sm:$0xf] %vm485_vm2, %v1107_v20  ;;  %v413_v24 = vadd.f32 %v412_v23, %v358_v13  ;;  %v473_v25 = vpop.f32.mrf.mxu1  ;;  %498 = vrot.lane.b32.xlu0 %v1107_v20, %s1644_s10 }
 0x148   : > { %496 = vst.msk [vmem:[#allocation3] sm:$0xf] %vm485_vm2, %v1109_v22  ;;  %v474_v26 = vadd.f32 %v473_v25, %v423_v14  ;;  %507 = vrot.lane.b32.xlu1 %v1109_v22, %s1644_s10  ;;  %v1137_v27 = vpop.f32.mrf.mxu0 }
 0x149   : > { %v1108_v28 = vpack.c.bf16 %v413_v24, %v413_v24  ;;  %v1145_v29 = vpop.f32.mrf.mxu1 }
 0x14a   : > { %v1110_v30 = vpack.c.bf16 %v474_v26, %v474_v26 }
 0x14b   : > { %487 = vst.msk [vmem:[#allocation2 + $0x4] sm:$0xf] %vm485_vm2, %v1108_v28  ;;  %516 = vrot.lane.b32.xlu0 %v1107_v20, %s1645_s21 }
 0x14c   : > { %497 = vst.msk [vmem:[#allocation3 + $0x4] sm:$0xf] %vm485_vm2, %v1110_v30  ;;  %509 = vrot.lane.b32.xlu1 %v1110_v30, %s1644_s10 }
 0x14f   : > { %525 = vrot.lane.b32.xlu0 %v1109_v22, %s1645_s21 }
 0x150   : > { %518 = vrot.lane.b32.xlu1 %v1108_v28, %s1645_s21 }
 0x153   : > { %534 = vrot.lane.b32.xlu0 %v1107_v20, %s1646_s15 }
 0x154   : > { %527 = vrot.lane.b32.xlu1 %v1110_v30, %s1645_s21 }
 0x157   : > { %500 = vrot.lane.b32.xlu0 %v1108_v28, %s1644_s10 }
 0x158   : > { %536 = vrot.lane.b32.xlu1 %v1108_v28, %s1646_s15 }
 0x15b   : > { %543 = vrot.lane.b32.xlu0 %v1109_v22, %s1646_s15 }
 0x15c   : > { %545 = vrot.lane.b32.xlu1 %v1110_v30, %s1646_s15 }
 0x1b9   : > { %v499_v31 = vpop.permute.xlu0 %498 }
 0x1ba   : > { %v508_v32 = vpop.permute.xlu1 %507  ;;  %505 = vst.msk [vmem:[#allocation2 + $0x8] sm:$0xf] %vm485_vm2, %v499_v31 }
 0x1bb   : > { %514 = vst.msk [vmem:[#allocation3 + $0x8] sm:$0xf] %vm485_vm2, %v508_v32 }
 0x1bd   : > { %v517_v33 = vpop.permute.xlu0 %516 }
 0x1be   : > { %v510_v34 = vpop.permute.xlu1 %509  ;;  %523 = vst.msk [vmem:[#allocation2 + $0x10] sm:$0xf] %vm485_vm2, %v517_v33 }
 0x1bf   : > { %515 = vst.msk [vmem:[#allocation3 + $0xc] sm:$0xf] %vm485_vm2, %v510_v34 }
 0x1c1   : > { %v526_v35 = vpop.permute.xlu0 %525 }
 0x1c2   : > { %532 = vst.msk [vmem:[#allocation3 + $0x10] sm:$0xf] %vm485_vm2, %v526_v35  ;;  %v519_v36 = vpop.permute.xlu1 %518 }
 0x1c3   : > { %524 = vst.msk [vmem:[#allocation2 + $0x14] sm:$0xf] %vm485_vm2, %v519_v36 }
 0x1c5   : > { %v535_v37 = vpop.permute.xlu0 %534 }
 0x1c6   : > { %541 = vst.msk [vmem:[#allocation2 + $0x18] sm:$0xf] %vm485_vm2, %v535_v37  ;;  %v528_v38 = vpop.permute.xlu1 %527 }
 0x1c7   : > { %533 = vst.msk [vmem:[#allocation3 + $0x14] sm:$0xf] %vm485_vm2, %v528_v38 }
 0x1c9   : > { %v501_v39 = vpop.permute.xlu0 %500 }
 0x1ca   : > { %v537_v40 = vpop.permute.xlu1 %536  ;;  %506 = vst.msk [vmem:[#allocation2 + $0xc] sm:$0xf] %vm485_vm2, %v501_v39 }
 0x1cb   : > { %542 = vst.msk [vmem:[#allocation2 + $0x1c] sm:$0xf] %vm485_vm2, %v537_v40 }
 0x1cd   : > { %v544_v41 = vpop.permute.xlu0 %543 }
 0x1ce   : > { %v546_v42 = vpop.permute.xlu1 %545  ;;  %550 = vst.msk [vmem:[#allocation3 + $0x18] sm:$0xf] %vm485_vm2, %v544_v41 }
 0x1cf   : > { %551 = vst.msk [vmem:[#allocation3 + $0x1c] sm:$0xf] %vm485_vm2, %v546_v42 }
 0x1d0 PF: > { %v1348_v43 = vld [vmem:[#allocation9 + $0x8] sm:$0xff]   ;;  %v1647_v44 = vmov 0.0   ;;  %v1349_v45 = vld [vmem:[#allocation9] sm:$0xff]   ;;  %vm1648_vm3 = vmmov 0   ;;  %s1081_s9 = sshll.u32 %s1611_s27, 3  ;;  %vm576_vm4 = vcmask 261120   ;;  %v560_v48 = vlaneseq }
 0x1d1   : > { %1146 = vmatprep.subr.bf16.mxu0 %v1647_v44  ;;  %1150 = vmatprep.mubr.msk.bf16.mxu0 %vm1648_vm3, %v1647_v44  ;;  %s553_s13 = scalar_lea.vmem %s1878_s18, %s1081_s9 [#allocation6]  ;;  %vm622_vm5 = vcmask 60416   ;;  %s1649_s3 = smov 104  }
 0x1d2   : > { %1147 = vmatpush3.bf16.msra.mxu0 %v1348_v43  ;;  %v1930_v46 = vld [vmem:[%s553_s13] sm:$0xff]  ;;  %v1935_v49 = vshrl.u32 %v560_v48, 7  ;;  %s1650_s4 = smov 120   ;;  %s1651_s29 = smov 112  }
 0x1d3   : > { %1148 = vmatprep.subr.bf16.mxu0 %v1647_v44  ;;  %v555_v47 = vpack.c.bf16 %v1930_v46, %v1930_v46  ;;  %s1943_s1 = smov 0  }
 0x1d4   : > { %v562_v50 = vsub.s32 0, %v1935_v49 }
 0x1d6   : > { %1149 = vmatpush3.bf16.msra.mxu0 %v1349_v45  ;;  %v563_v51 = vrot.slane %v1900_v0, %v562_v50 }
 0x1d9   : > { %1151 = vmatmul.mubr.msk.bf16.vlgmr.msra.gmra.mxu0 %vm576_vm4, %v555_v47 }
 0x299   : > { %v614_v52 = vpop.f32.mrf.mxu0 }
 0x29a   : > { %v615_v53 = vadd.f32 %v614_v52, %v563_v51 }
 0x29b   : > { %v1152_v54 = vpop.f32.mrf.mxu0 }
 0x29c   : > { %v620_v55 = vmul.f32 0.35355338, %v615_v53 }
 0x29d   : > { %v617_v56 = vpop.f32.mrf.mxu0 }
 0x29e   : > { %v621_v57 = vpack.c.bf16 %v620_v55, %v620_v55 }
 0x29f   : > { %v1153_v58 = vpop.f32.mrf.mxu0 }
 0x2a0   : > { %637 = vrot.lane.b32.xlu1 %v621_v57, %s1649_s3  ;;  %627 = vrot.lane.b32.xlu0 %v621_v57, %s1650_s4  ;;  %623 = vst.msk [vmem:[#allocation4] sm:$0xf] %vm622_vm5, %v621_v57 }
 0x2a4   : > { %632 = vrot.lane.b32.xlu0 %v621_v57, %s1651_s29 }
 0x312   : > { %v638_v59 = vpop.permute.xlu1 %637  ;;  %v628_v60 = vpop.permute.xlu0 %627 }
 0x313   : > { %641 = vst.msk [vmem:[#allocation4 + $0xc] sm:$0xf] %vm622_vm5, %v638_v59  ;;  %631 = vst.msk [vmem:[#allocation4 + $0x4] sm:$0xf] %vm622_vm5, %v628_v60 }
 0x316   : > { %v633_v61 = vpop.permute.xlu0 %632 }
 0x317   : > { %636 = vst.msk [vmem:[#allocation4 + $0x8] sm:$0xf] %vm622_vm5, %v633_v61 }
 0x318 LB: >> { %v1652_v62 = vmov 0.0   ;;  %vm1653_vm6 = vmmov 0   ;;  %s1112_s24 = sshll.u32 %s1631_s1, 3  ;;  %vm665_vm7 = vcmask 64512   ;;  %s1086_s19 = sshll.u32 %s1631_s1, 2  ;;  %vm712_vm8 = vcmask 130048   ;;  %s1631_s1 = sphi %s1943_s1, %s647_s1  }
 0x319   : >> { %1154 = vmatprep.subr.bf16.mxu0 %v1652_v62  ;;  %1156 = vmatprep.mubr.msk.bf16.mxu0 %vm1653_vm6, %v1652_v62  ;;  %s653_s8 = scalar_lea.vmem [#allocation2], %s1112_s24  ;;  %s649_s18 = scalar_lea.vmem [#allocation4], %s1086_s19 }
 0x31a   : >> { %1160 = vmatprep.subr.bf16.mxu1 %v1652_v62  ;;  %1162 = vmatprep.mubr.msk.bf16.mxu1 %vm1653_vm6, %v1652_v62  ;;  %v1350_v63 = vld [vmem:[%s653_s8] sm:$0xff]   ;;  %s657_s11 = scalar_lea.vmem [#allocation3], %s1112_s24  ;;  %s778_s14 = scalar_lea.vmem [#allocation5], %s1086_s19 }
 0x31b   : >> { %v670_v1 = vsel %vm665_vm7, %v1350_v63, 0  ;;  %v1351_v8 = vld [vmem:[%s657_s11] sm:$0xff]   ;;  %s647_s1 = sadd.s32 1, %s1631_s1  }
 0x31c   : >> { %1155 = vmatpush3.bf16.xpose.msra.mxu0 %v670_v1  ;;  %1161 = vmatpush3.bf16.msra.mxu1 %v1351_v8  ;;  %p644_p1 = scmp.ge.s32.totalorder %s647_s1, 4  }
 0x31d   : > { %1166 = vmatprep.subr.bf16.mxu0 (%p644_p1), %v1647_v44  ;;  %s1654_s10 = smov (%p644_p1), 8   ;;  %v1359_v27 = vld [vmem:[#allocation14 + $0x8] sm:$0xff] (%p644_p1)   ;;  %s1655_s21 = smov (%p644_p1), 24   ;;  %v1360_v28 = vld [vmem:[#allocation14] sm:$0xff] (%p644_p1)   ;;  %vm809_vm9 = vcmask (%p644_p1), 195584   ;;  %v818_v36 = vsub.s32 (%p644_p1), 3, %v1935_v49 }
 0x31e   : >> { %v650_v2 = vld [vmem:[%s649_s18] sm:$0xf]  ;;  %s1656_s15 = smov (%p644_p1), 16   ;;  %s1102_s9 = sshll.u32 (%p644_p1), %s1615_s28, 1  ;;  %v896_v55 = vsub.s32 (%p644_p1), 5, %v1935_v49 }
 0x31f   : > { %v819_v37 = vrot.slane (%p644_p1), %v1900_v0, %v818_v36  ;;  %s912_s3 = sadd.s32 (%p644_p1), %s1611_s27, %s1102_s9  ;;  %s916_s29 = sshll.u32 (%p644_p1), %s341_s17, 4  ;;  %s917_s29 = int_to_ptr.vmem [resolvable:$true] %s916_s29 }
 0x320   : > { %v897_v59 = vrot.slane (%p644_p1), %v1900_v0, %v896_v55  ;;  %s1103_s4 = sshll.u32 (%p644_p1), %s912_s3, 7  ;;  %s2077_s8 = sld [smem:[#allocation29_spill]] (%p644_p1) }
 0x321   : > { %s901_s28 = scalar_lea.sflag (%p644_p1), [#allocation8], %s339_s6  ;;  %s1495_s27 = scalar_lea.vmem (%p644_p1), %s917_s29, 128 }
 0x322   : > { %p1496_p11 = scmp.ne.s32.totalorder (%p644_p1), %s917_s29, %s1495_s27  ;;  %s1657_s18 = smov (%p644_p1), [#allocation15]  }
 0x323   : >> { %1157 = vmatmul.mubr.msk.bf16.vlgmr.msra.gmra.mxu0 %vm665_vm7, %v650_v2  ;;  %s1499_s11 = sshll.u32 (%p644_p1), %s1657_s18, 4  ;;  %s1500_s11 = int_to_ptr.vmem [resolvable:$false] %s1499_s11 }
 0x324   : > { %1170 = vmatprep.mubr.msk.bf16.mxu0 (%p644_p1), %vm1648_vm3, %v1647_v44  ;;  %1167 = vmatpush3.bf16.msra.mxu0 (%p644_p1), %v1359_v27  ;;  %p1497_p13 = pnand (%p644_p1), %p1496_p11, %p1763_p6  ;;  %p1502_p9 = scmp.lt.s32.totalorder (%p644_p1), %s917_s29, %s1500_s11 }
 0x325   : > { %1168 = vmatprep.subr.bf16.mxu0 (%p644_p1), %v1647_v44 }
 0x326   : > { %s914_s19 = scalar_lea.hbm (%p644_p1), %s2077_s8, %s1103_s4  ;;  %p1498_p8 = pneg (%p644_p1), %p1497_p13 }
 0x328   : > { %1169 = vmatpush3.bf16.msra.mxu0 (%p644_p1), %v1360_v28 }
 0x3e3   : >> { %v706_v3 = vpop.f32.mrf.mxu0 }
 0x3e4   : >> { %v713_v4 = vsel %vm712_vm8, %v706_v3, -inf }
 0x3e5   : >> { %714 = vmax.xlane.f32.xlu0 %v713_v4  ;;  %v1158_v5 = vpop.f32.mrf.mxu0 }
 0x3e7   : >> { %v709_v6 = vpop.f32.mrf.mxu0 }
 0x3e9   : >> { %v1159_v7 = vpop.f32.mrf.mxu0 }
 0x46e   : >> { %v715_v9 = vpop.xlane.xlu0 %714 }
 0x46f   : >> { %v716_v10 = vsub.f32 %v706_v3, %v715_v9 }
 0x471   : >> { %v717_v11 = vpack.c.bf16 %v716_v10, %v716_v10 }
 0x473   : >> { %v719_v12 = vmul.bf16 1069105081, %v717_v11 }
 0x475   : >> { %1352 = vpow.bf16 %v719_v12 }
 0x483   : >> { %v1353_v13 = vpop.eup %1352 }
 0x484   : >> { %1163 = vmatmul.mubr.msk.bf16.vlgmr.msra.gmra.mxu1 %vm712_vm8, %v1353_v13  ;;  %v721_v14 = vunpack.c.l.bf16 %v1353_v13 }
 0x486   : >> { %v722_v15 = vsel %vm712_vm8, %v721_v14, 0.0 }
 0x487   : >> { %723 = vadd.xlane.f32.xlu0 %v722_v15 }
 0x510   : >> { %v724_v16 = vpop.xlane.xlu0 %723 }
 0x511   : >> { %1354 = vrcp.f32 %v724_v16 }
 0x51e   : >> { %v1355_v17 = vpop.eup %1354 }
 0x544   : >> { %v769_v18 = vpop.f32.mrf.mxu1 }
 0x545   : >> { %v775_v19 = vmul.f32 %v1355_v17, %v769_v18 }
 0x546   : >> { %v1164_v20 = vpop.f32.mrf.mxu1  ;;  %646 = sbr.rel (!%p644_p1) target bundleno = 792 (0x318), region = 133 }
 0x547   : >> { %v776_v21 = vpack.c.bf16 %v775_v19, %v775_v19 }
 0x548   : >> { %v772_v22 = vpop.f32.mrf.mxu1 }
 0x549   : >> { %779 = vst.msk [vmem:[%s778_s14] sm:$0xf] %vm622_vm5, %v776_v21  ;;  %s1501_s14 = scalar_lea.vmem (%p644_p1), %s1500_s11, 256 }
 0x54a   : >> { %v1165_v23 = vpop.f32.mrf.mxu1  ;;  %p1503_p10 = scmp.lt.s32.totalorder (%p644_p1), %s1501_s14, %s1495_s27 }
 0x54c   : > { %p1504_p0 = por %p1503_p10, %p1502_p9 }
 0x54e   : > { %p1505_p12 = pnand %p1504_p0, %p1498_p8 }
 0x550   : > { %v1356_v24 = vld [vmem:[#allocation5 + $0x4] ss:$0 sps:$4 sm:$0xff]   ;;  %v1357_v25 = vld [vmem:[#allocation5 + $0x8] ss:$0 sps:$4 sm:$0xff]   ;;  %v1358_v26 = vld [vmem:[#allocation5 + $0xc] ss:$0 sps:$4 sm:$0xff]  }
 0x551   : > { %790 = vrot.lane.b32.xlu0 %v1356_v24, %s1654_s10  ;;  %800 = vrot.lane.b32.xlu1 %v1358_v26, %s1655_s21  ;;  %v780_v30 = vld [vmem:[#allocation5] sm:$0xf] }
 0x555   : > { %795 = vrot.lane.b32.xlu0 %v1357_v25, %s1656_s15 }
 0x5c3   : > { %v791_v29 = vpop.permute.xlu0 %790  ;;  %v801_v31 = vpop.permute.xlu1 %800 }
 0x5c4   : > { %v805_v32 = vsel %vm665_vm7, %v780_v30, %v791_v29 }
 0x5c7   : > { %v796_v33 = vpop.permute.xlu0 %795 }
 0x5c8   : > { %v808_v34 = vsel %vm712_vm8, %v805_v32, %v796_v33 }
 0x5c9   : > { %v811_v35 = vsel %vm809_vm9, %v808_v34, %v801_v31 }
 0x5ca   : > { %1171 = vmatmul.mubr.msk.bf16.vlgmr.msra.gmra.mxu0 %vm576_vm4, %v811_v35 }
 0x68a   : > { %v868_v38 = vpop.f32.mrf.mxu0 }
 0x68b   : > { %v869_v39 = vadd.f32 %v868_v38, %v819_v37 }
 0x68c   : > { %v1172_v40 = vpop.f32.mrf.mxu0 }
 0x68d   : > { %v874_v41 = vadd.f32 %v869_v39, %v1930_v46  ;;  %v891_v46 = vsub.s32 4, %v1935_v49 }
 0x68e   : > { %v871_v42 = vpop.f32.mrf.mxu0 }
 0x68f   : > { %v875_v43 = vsel %vm576_vm4, %v874_v41, 0.0  ;;  %v892_v56 = vrot.slane %v1900_v0, %v891_v46 }
 0x690   : > { %876 = vadd.xlane.f32.xlu1 %v875_v43  ;;  %v1173_v44 = vpop.f32.mrf.mxu0 }
 0x719   : > { %v877_v45 = vpop.xlane.xlu1 %876 }
 0x71a   : > { %v879_v47 = vmul.f32 0.03125, %v877_v45 }
 0x71c   : > { %v880_v48 = vsub.f32 %v874_v41, %v879_v47 }
 0x71e   : > { %v881_v50 = vmul.f32 %v880_v48, %v880_v48 }
 0x720   : > { %v882_v51 = vsel %vm576_vm4, %v881_v50, 0.0 }
 0x721   : > { %883 = vadd.xlane.f32.xlu0 %v882_v51 }
 0x7aa   : > { %v884_v52 = vpop.xlane.xlu0 %883 }
 0x7ab   : > { %v885_v53 = vmul.f32 0.03125, %v884_v52 }
 0x7ad   : > { %v886_v54 = vadd.f32 1e-05, %v885_v53 }
 0x7af   : > { %1361 = vrsqrt.f32 %v886_v54 }
 0x7bc   : > { %v1362_v57 = vpop.eup %1361 }
 0x7bd   : > { %v888_v58 = vmul.f32 %v1362_v57, %v880_v48 }
 0x7bf   : > { %v893_v60 = vmul.f32 %v892_v56, %v888_v58 }
 0x7c1   : > { %v898_v61 = vadd.f32 %v897_v59, %v893_v60 }
 0x7c3   : > { %899 = vst.msk [vmem:[%s341_s17] sm:$0xff] %vm576_vm4, %v898_v61 }
 0x7c4   : > { %1508 = shalt.err (!%p1505_p12)
}
 0x7c5   : > { %s1509_s10 = scalar_lea.hbm %s914_s19, 128  ;;  %s1513_s17 = scalar_lea.hbm %s2077_s8, 512 }
 0x7c6   : > { %p1510_p2 = scmp.ne.s32.totalorder %s914_s19, %s1509_s10  ;;  %p1514_p3 = scmp.lt.s32.totalorder %s914_s19, %s2077_s8 }
 0x7c7   : > { %p1515_p4 = scmp.lt.s32.totalorder %s1513_s17, %s1509_s10 }
 0x7c8   : > { %p1511_p5 = pnand %p1510_p2, %p1763_p6 }
 0x7c9   : > { %p1516_p1 = por %p1515_p4, %p1514_p3 }
 0x7ca   : > { %p1512_p7 = pneg %p1511_p5 }
 0x7cc   : > { %p1517_p11 = pnand %p1516_p1, %p1512_p7 }
 0x7ce   : > { %1520 = shalt.err (!%p1517_p11)
}
 0x7cf   : > { %1192 = dma.vmem_to_hbm [thread:$0]  (%p1763_p6), %s917_s29, 128, %s914_s19, %s901_s28  }
 0x7d0 PF: > { %s2078_s9 = sld [smem:[#allocation20_spill]]  ;;  %p1224_p13 = scmp.ge.s32.totalorder %s1627_s7, 2 }
 0x7d1   : > { %s2079_s3 = sld [smem:[#allocation23_spill]] }
 0x7d6   : > { %s928_s4 = sand.u32 1, %s2078_s9  }
 0x7d7   : > { %p2080_p8 = scmp.ne.s32.totalorder %s2079_s3, 0  ;;  %s929_s1 = scalar_lea.sflag [#allocation8], %s928_s4 }
 0x7d9   : > { %p1212_p9 = pnand %p1224_p13, %p2080_p8 }
 0x7db   : > { %p1213_p10 = pneg %p1212_p9 }
 0x7dd   : > { %1582 = dma.done.wait (%p1213_p10), %s929_s1, 128  }
 0x7de   : > { %1584 = vsyncadd (%p1213_p10), %s929_s1, 4294967168  ;;  %s24_s7 = sadd.s32 1, %s1627_s7   ;;  %s2081_s27 = sld [smem:[#allocation21_spill]] }
 0x7df   : > { %p21_p0 = scmp.ge.s32.totalorder %s24_s7, 6   ;;  %s2082_s29 = sld [smem:[#allocation24_spill]] }
 0x7e0   : > { %s2083_s21 = smov %s1591_s22  ;;  %s2084_s22 = smov %s1595_s23 }
 0x7e1   : > { %s2085_s23 = smov %s1858_s2  ;;  %s2086_s24 = smov %s1603_s25 }
 0x7e2   : > { %s2087_s25 = smov %s1607_s26  ;;  %s2088_s26 = smov %s1855_s20 }
 0x7e3   : > { %s2089_s28 = smov %s1623_s30  ;;  %s2090_s30 = smov %s2096_s16 }
 0x7e4   :  { %23 = sbr.rel (!%p21_p0) target bundleno = 17 (0x11), region = 144 }
 0x7e9   :  { %934 = vsyncpa [#allocation7], 1 }
 0x7ea   :  { %936 = vsyncpa [#allocation7 + $0x1], 1 }
 0x7eb   :  { %937 = vsyncpa [#allocation10], 1 }
 0x7ec   :  { %938 = vsyncpa [#allocation13], 1 }
 0x7ed   :  { %939 = vsyncpa [#allocation8], 1 }
 0x7ee   :  { %941 = vsyncpa [#allocation8 + $0x1], 1 }

</bundles_post_ra>
